<compile_context>
chip_gen: v5e
topology: v5e:2x2
jax: 0.10.0
libtpu: 0.0.40
codegen_flags: <defaults>
</compile_context>

<pallas_src>
import math

import jax
import jax.numpy as jnp
from jax.experimental import pallas as pl
from jax.experimental.pallas import tpu as pltpu


def _map_kernel_split(x0_ref, x1_ref, mean_ref, scale_ref):
    # x0_ref / x1_ref are the two lane-dense halves of the feature axis.
    mean_ref[...] = jnp.tanh(x0_ref[...]).astype(mean_ref.dtype)
    scale_ref[...] = (0.55 + 0.45 * jnp.tanh(x1_ref[...])).astype(scale_ref.dtype)


def _map_kernel_full(x_ref, mean_ref, scale_ref):
    # Fallback when the half-width n is not a multiple of 128: take the full
    # feature block but still tanh each half separately (smaller live temps).
    n = mean_ref.shape[-1]
    mean_ref[...] = jnp.tanh(x_ref[:, :n]).astype(mean_ref.dtype)
    scale_ref[...] = (0.55 + 0.45 * jnp.tanh(x_ref[:, n:])).astype(scale_ref.dtype)


def map_continuous_to_action(x, *, max_block_bytes=8 << 20):
    """Pallas equivalent of MapContinuousToAction.forward."""
    feat = x.shape[-1]
    assert feat % 2 == 0, "last dim must be even"
    n = feat // 2
    lead = x.shape[:-1]
    rows = math.prod(lead) if lead else 1
    x2 = x.reshape(rows, feat)

    itemsize = jnp.dtype(x.dtype).itemsize
    # Bytes resident per row per grid step: input (feat) + both outputs (feat).
    per_row_bytes = 2 * feat * itemsize
    # Budget covers double-buffering (x2) of every block.
    tile = max_block_bytes // (2 * per_row_bytes)
    tile = max(8, min(1024, (tile // 8) * 8))

    if rows <= tile:
        # Single block over the row axis; a full-extent block satisfies the
        # (8,128) tiling rule even if rows is not a multiple of 8.
        tile = rows
        padded_rows = rows
    else:
        padded_rows = pl.cdiv(rows, tile) * tile
        if padded_rows != rows:
            x2 = jnp.pad(x2, ((0, padded_rows - rows), (0, 0)))

    grid = (padded_rows // tile,)

    out_shape = (
        jax.ShapeDtypeStruct((padded_rows, n), x.dtype),
        jax.ShapeDtypeStruct((padded_rows, n), x.dtype),
    )
    out_specs = (
        pl.BlockSpec((tile, n), lambda i: (i, 0)),
        pl.BlockSpec((tile, n), lambda i: (i, 0)),
    )

    # VMEM per grid step (input + both outputs), doubled for pipelining, plus
    # headroom; floor 4 MiB, capped below v7x's 64 MiB physical VMEM.
    block_bytes = 2 * tile * feat * itemsize
    vmem_bytes = int(min(48 << 20, max(4 << 20, 4 * block_bytes)))
    cparams = pltpu.CompilerParams(
        dimension_semantics=("parallel",),  # independent rows -> megacore split
        vmem_limit_bytes=vmem_bytes,
    )

    if n % 128 == 0:
        # Lane-dense path: same array bound twice, each spec pulls one half.
        mean, scale = pl.pallas_call(
            _map_kernel_split,
            out_shape=out_shape,
            grid=grid,
            in_specs=[
                pl.BlockSpec((tile, n), lambda i: (i, 0)),
                pl.BlockSpec((tile, n), lambda i: (i, 1)),
            ],
            out_specs=out_specs,
            compiler_params=cparams,
        )(x2, x2)
    else:
        # Correct fallback (in-kernel split crosses a lane boundary) when n is
        # not lane-aligned.
        mean, scale = pl.pallas_call(
            _map_kernel_full,
            out_shape=out_shape,
            grid=grid,
            in_specs=[pl.BlockSpec((tile, feat), lambda i: (i, 0))],
            out_specs=out_specs,
            compiler_params=cparams,
        )(x2)

    if padded_rows != rows:
        mean = mean[:rows]
        scale = scale[:rows]

    out_sh = lead + (n,)
    return mean.reshape(out_sh), scale.reshape(out_sh)


def _reference(x):
    t = jnp.tanh(x)
    n = x.shape[-1] // 2
    return t[..., :n], 0.55 + 0.45 * t[..., n:]


if __name__ == "__main__":
    key = jax.random.PRNGKey(0)
    # Small shapes consistent with the module: batch=2, seq=8, feat=256.
    x = jax.random.normal(key, (2, 8, 256), dtype=jnp.float32) * 2.0

    mean, scale = jax.block_until_ready(map_continuous_to_action(x))

    ref_mean, ref_scale = _reference(x)
    assert mean.shape == (2, 8, 128) and scale.shape == (2, 8, 128)
    assert jnp.allclose(mean, ref_mean, atol=1e-5, rtol=1e-5)
    assert jnp.allclose(scale, ref_scale, atol=1e-5, rtol=1e-5)

    # Exercise the non-lane-aligned fallback path too (n = 96).
    x_odd = jax.random.normal(key, (4, 192), dtype=jnp.float32)
    m2, s2 = jax.block_until_ready(map_continuous_to_action(x_odd))
    rm2, rs2 = _reference(x_odd)
    assert jnp.allclose(m2, rm2, atol=1e-5, rtol=1e-5)
    assert jnp.allclose(s2, rs2, atol=1e-5, rtol=1e-5)

    print("KERNEL_OK")
</pallas_src>

<mosaic_0001>
module attributes {stable_mosaic.version = 11 : i64} {
  func.func @_map_kernel_split(%arg0: i32, %arg1: memref<16x128xf32, #tpu.memory_space<vmem>>, %arg2: memref<16x128xf32, #tpu.memory_space<vmem>>, %arg3: memref<16x128xf32, #tpu.memory_space<vmem>>, %arg4: memref<16x128xf32, #tpu.memory_space<vmem>>) attributes {dimension_semantics = [#tpu.dimension_semantics<parallel>], iteration_bounds = array<i64: 1>, scalar_prefetch = 0 : i64, scratch_operands = 0 : i64, tpu.core_type = #tpu.core_type<tc>, window_params = [{transform_indices = @transform_0, window_bounds = array<i64: 16, 128>}, {transform_indices = @transform_1, window_bounds = array<i64: 16, 128>}, {transform_indices = @transform_2, window_bounds = array<i64: 16, 128>}, {transform_indices = @transform_3, window_bounds = array<i64: 16, 128>}]} {
    %c0 = arith.constant 0 : index
    %c0_0 = arith.constant 0 : index
    %0 = vector.load %arg1[%c0, %c0_0] : memref<16x128xf32, #tpu.memory_space<vmem>>, vector<16x128xf32>
    %1 = math.tanh %0 : vector<16x128xf32>
    %c0_1 = arith.constant 0 : index
    %c0_2 = arith.constant 0 : index
    %2 = vector.load %arg3[%c0_1, %c0_2] : memref<16x128xf32, #tpu.memory_space<vmem>>, vector<16x128xf32>
    tpu.vector_store %arg3[%c0_1, %c0_2], %1 {strides = array<i32>} : memref<16x128xf32, #tpu.memory_space<vmem>>, vector<16x128xf32>,
    %c0_3 = arith.constant 0 : index
    %c0_4 = arith.constant 0 : index
    %3 = vector.load %arg2[%c0_3, %c0_4] : memref<16x128xf32, #tpu.memory_space<vmem>>, vector<16x128xf32>
    %4 = math.tanh %3 : vector<16x128xf32>
    %cst = arith.constant 4.500000e-01 : f32
    %5 = vector.broadcast %cst : f32 to vector<16x128xf32>
    %6 = arith.mulf %5, %4 : vector<16x128xf32>
    %cst_5 = arith.constant 5.500000e-01 : f32
    %7 = vector.broadcast %cst_5 : f32 to vector<16x128xf32>
    %8 = arith.addf %7, %6 : vector<16x128xf32>
    %c0_6 = arith.constant 0 : index
    %c0_7 = arith.constant 0 : index
    %9 = vector.load %arg4[%c0_6, %c0_7] : memref<16x128xf32, #tpu.memory_space<vmem>>, vector<16x128xf32>
    tpu.vector_store %arg4[%c0_6, %c0_7], %8 {strides = array<i32>} : memref<16x128xf32, #tpu.memory_space<vmem>>, vector<16x128xf32>,
    return
  }
  func.func @transform_0(%arg0: i32) -> (i32, i32) {
    %c0_i32 = arith.constant 0 : i32
    %c0_i32_0 = arith.constant 0 : i32
    return %arg0, %c0_i32 : i32, i32
  }
  func.func @transform_1(%arg0: i32) -> (i32, i32) {
    %c1_i32 = arith.constant 1 : i32
    %c0_i32 = arith.constant 0 : i32
    return %arg0, %c1_i32 : i32, i32
  }
  func.func @transform_2(%arg0: i32) -> (i32, i32) {
    %c0_i32 = arith.constant 0 : i32
    %c0_i32_0 = arith.constant 0 : i32
    return %arg0, %c0_i32 : i32, i32
  }
  func.func @transform_3(%arg0: i32) -> (i32, i32) {
    %c0_i32 = arith.constant 0 : i32
    %c0_i32_0 = arith.constant 0 : i32
    return %arg0, %c0_i32 : i32, i32
  }
}

</mosaic_0001>

<bundles_post_ra>
// kernel: tpu_custom_call.1
= control target key start
LH: loop header
LB: loop body
LE: loop exit
PB: predicated region body
PF: predicated region fallthrough
CT: control target
= control target key end

     0   :  { %9 = vsyncpa [#allocation3], 0  ;;  %s270_s0 = inlined_call_operand.hbm [shape: f32[16,256], index: 0, kind: input, shape index: {}]   ;;  %s271_s1 = inlined_call_operand.hbm [shape: f32[16,256], index: 1, kind: input, shape index: {}]   ;;  %s272_s2 = inlined_call_operand.hbm [shape: f32[16,128], index: 2, kind: output, shape index: {0}]   ;;  %s273_s3 = inlined_call_operand.hbm [shape: f32[16,128], index: 3, kind: output, shape index: {1}]  }
   0x1   :  { %10 = vsyncpa [#allocation6], 0 }
   0x2   :  { %11 = vsyncpa [#allocation4], 0 }
   0x3   :  { %12 = vsyncpa [#allocation9], 0  ;;  %s17_s14 = sshll.u32 %s270_s0, 4  ;;  %s221_s15 = smov [#allocation2]   ;;  %s18_s14 = int_to_ptr.hbm [resolvable:$true] %s17_s14 }
   0x4   :  { %s19_s16 = sshll.u32 %s221_s15, 4  ;;  %s222_s17 = smov 256   ;;  %s20_s16 = int_to_ptr.vmem [resolvable:$true] %s19_s16 }
   0x5   :  { %s223_s18 = smov 128   ;;  %s224_s19 = smov 8  }
   0x6   :  { %25 = dma.hbm_to_vmem [thread:$0]  %s18_s14, 256, %s20_s16, [#allocation3], %s222_s17, %s223_s18, %s224_s19  }
   0x7   :  { %s30_s22 = scalar_lea.hbm %s271_s1, 8  ;;  %s225_s24 = smov [#allocation5]  }
   0x8   :  { %s31_s23 = sshll.u32 %s30_s22, 4  ;;  %s33_s25 = sshll.u32 %s225_s24, 4  ;;  %s32_s23 = int_to_ptr.hbm [resolvable:$true] %s31_s23  ;;  %s34_s25 = int_to_ptr.vmem [resolvable:$true] %s33_s25 }
   0x9   :  { %39 = dma.hbm_to_vmem [thread:$0]  %s32_s23, 256, %s34_s25, [#allocation6], %s222_s17, %s223_s18, %s224_s19  }
   0xa   :  { %213 = dma.done.wait [#allocation3], 256  }
   0xb   :  { %214 = vsyncadd [#allocation3], 4294967040 }
   0xc   :  { %215 = dma.done.wait [#allocation6], 256  }
   0xd   :  { %216 = vsyncadd [#allocation6], 4294967040  ;;  %v48_v0 = vld [vmem:[#allocation2] sm:$0xff]  ;;  %v49_v1 = vld [vmem:[#allocation2 + $0x8] sm:$0xff]  ;;  %s226_s0 = smov [#allocation7]   ;;  %s70_s28 = sshll.u32 %s272_s2, 4  ;;  %s71_s28 = int_to_ptr.hbm [resolvable:$true] %s70_s28 }
   0xe   :  { %v54_v2 = vld [vmem:[#allocation5] sm:$0xff]  ;;  %109 = vtanh.f32 %v48_v0  ;;  %v55_v3 = vld [vmem:[#allocation5 + $0x8] sm:$0xff]  ;;  %s68_s1 = sshll.u32 %s226_s0, 4  ;;  %s227_s29 = smov [#allocation8]   ;;  %s69_s1 = int_to_ptr.vmem [resolvable:$true] %s68_s1 }
   0xf   :  { %111 = vtanh.f32 %v49_v1  ;;  %s81_s30 = sshll.u32 %s227_s29, 4  ;;  %s83_s6 = sshll.u32 %s273_s3, 4  ;;  %s82_s30 = int_to_ptr.vmem [resolvable:$true] %s81_s30  ;;  %s84_s6 = int_to_ptr.hbm [resolvable:$true] %s83_s6 }
  0x10   :  { %113 = vtanh.f32 %v54_v2 }
  0x11   :  { %115 = vtanh.f32 %v55_v3 }
  0x14   :  { %v110_v4 = vpop.eup %109 }
  0x15   :  { %v112_v5 = vpop.eup %111  ;;  %52 = vst [vmem:[#allocation7] sm:$0xff] %v110_v4 }
  0x16   :  { %v114_v6 = vpop.eup %113  ;;  %53 = vst [vmem:[#allocation7 + $0x8] sm:$0xff] %v112_v5 }
  0x17   :  { %v116_v7 = vpop.eup %115  ;;  %v58_v8 = vmul.f32 0.45, %v114_v6  ;;  %76 = dma.vmem_to_hbm [thread:$0]  %s69_s1, 256, %s71_s28, [#allocation4], %s223_s18, %s223_s18, %s224_s19  }
  0x18   :  { %v59_v9 = vmul.f32 0.45, %v116_v7 }
  0x19   :  { %v60_v10 = vadd.f32 0.55, %v58_v8 }
  0x1a   :  { %v61_v11 = vadd.f32 0.55, %v59_v9 }
  0x1b   :  { %62 = vst [vmem:[#allocation8] sm:$0xff] %v60_v10 }
  0x1c   :  { %63 = vst [vmem:[#allocation8 + $0x8] sm:$0xff] %v61_v11 }
  0x1d   :  { %89 = dma.vmem_to_hbm [thread:$0]  %s82_s30, 256, %s84_s6, [#allocation9], %s223_s18, %s223_s18, %s224_s19  }
  0x1e   :  { %217 = dma.done.wait [#allocation4], 256  }
  0x1f   :  { %218 = vsyncadd [#allocation4], 4294967040 }
  0x20   :  { %219 = dma.done.wait [#allocation9], 256  }
  0x21   :  { %220 = vsyncadd [#allocation9], 4294967040 }
  0x22   :  { %98 = vsyncpa [#allocation3], 1 }
  0x23   :  { %99 = vsyncpa [#allocation6], 1 }
  0x24   :  { %100 = vsyncpa [#allocation4], 1 }
  0x25   :  { %101 = vsyncpa [#allocation9], 1 }

</bundles_post_ra>
